<compile_context>
chip_gen: v6e
topology: v6e:2x2x1
jax: 0.10.0
libtpu: 0.0.40
codegen_flags: <defaults>
</compile_context>

<pallas_src>
import functools

import jax
import jax.numpy as jnp
from jax.experimental import pallas as pl
from jax.experimental.pallas import tpu as pltpu

# --- model hyperparameters (small, consistent with the module) -------------
B = 8          # batch
L = 8          # sentence_length
D = 32         # vector_dim
V = 16         # len(vocab)
C = L + 1      # num classes = sentence_length + 1


def _char_pos_kernel(n_cls, ids_ref, weff_ref, b_ref, out_ref):
    # n_cls:    static int, number of real (unpadded) classes
    # ids_ref:  (bm, L)      int32 token ids
    # weff_ref: (V, C_pad)   f32   folded (emb_table @ W) / L, zero-padded cols
    # b_ref:    (1, C_pad)   f32   bias, zero-padded cols
    # out_ref:  (bm, C_pad)  f32   softmax probabilities (padded cols == 0)
    ids = ids_ref[...]                                    # (bm, L) int32
    bm, seq_len = ids.shape
    vocab = weff_ref.shape[0]
    c_pad = out_ref.shape[1]

    # Token-count histogram: counts[b, v] = #{l : ids[b, l] == v}.
    # Embedding gather + mean-pool is linear in these counts, so
    # counts @ W_eff == logits - b exactly (padding_idx row of W_eff is 0).
    vocab_iota = jax.lax.broadcasted_iota(jnp.int32, (bm, vocab), 1)
    counts = jnp.zeros((bm, vocab), jnp.float32)
    for l in range(seq_len):                              # static, tiny unroll
        counts = counts + (ids[:, l:l + 1] == vocab_iota).astype(jnp.float32)

    # Single MXU pass + bias.
    logits = jnp.dot(counts, weff_ref[...],
                     preferred_element_type=jnp.float32) + b_ref[...]

    # Mask the lane-padding columns so they carry zero softmax mass.
    col = jax.lax.broadcasted_iota(jnp.int32, (bm, c_pad), 1)
    logits = jnp.where(col < n_cls, logits, -jnp.inf)

    # Numerically-stable softmax with an EXACT divide (rows sum to 1).
    m = jnp.max(logits, axis=-1, keepdims=True)
    e = jnp.exp(logits - m)
    denom = jnp.sum(e, axis=-1, keepdims=True)
    out_ref[...] = e / denom


def prepare_params(emb_table, w, b, seq_len, c_pad=None):
    """One-time, call-constant parameter folding + lane padding.

    Call ONCE at setup (outside the jitted per-call inference path).

    emb_table: (V, D) with row 0 == 0 (padding_idx=0).
    w:         (D, C) classifier weight (transposed vs. nn.Linear storage).
    b:         (C,)   classifier bias.
    Returns (w_eff_padded (V, c_pad), bias_padded (1, c_pad), n_cls).
    """
    vocab, _ = emb_table.shape
    n_cls = w.shape[1]
    if c_pad is None:
        c_pad = max(128, ((n_cls + 127) // 128) * 128)
    # Fold embedding + mean-pool + classifier weight; keep full f32 precision.
    w_eff = jnp.dot(emb_table, w,
                    precision=jax.lax.Precision.HIGHEST) * (1.0 / seq_len)
    w_eff_p = jnp.zeros((vocab, c_pad), jnp.float32).at[:, :n_cls].set(w_eff)
    b_p = jnp.zeros((1, c_pad), jnp.float32).at[0, :n_cls].set(
        b.astype(jnp.float32))
    return w_eff_p, b_p, n_cls


def char_position_model(x_ids, w_eff_p, b_p, *, n_cls, block_b=1024, trim=True):
    """x_ids: (B, L) int32 token indices.  Returns softmax probs.

    w_eff_p, b_p: outputs of prepare_params (call-constant, prepared once).
    trim=True  -> (B, n_cls) f32
    trim=False -> (b_pad, c_pad) f32 lane-dense slab (padded entries are 0).
    """
    batch, seq_len = x_ids.shape
    vocab, c_pad = w_eff_p.shape

    # Batch tiling: one step for small batches (grid=1 beats splitting a tiny
    # kernel); large batches split into an EVEN number of big tiles so v7x's
    # two TensorCores both get work on the "parallel" grid axis.
    b8 = ((batch + 7) // 8) * 8
    if b8 <= block_b:
        steps, bm = 1, b8
    else:
        steps = -(-b8 // block_b)
        steps += steps % 2                                # even -> 2-TC shard
        bm = ((-(-b8 // steps) + 7) // 8) * 8
    b_pad = steps * bm

    # Skip the pad copy when it is a no-op.
    if b_pad == batch:
        ids_p = x_ids
    else:
        ids_p = jnp.zeros((b_pad, seq_len), x_ids.dtype).at[:batch].set(x_ids)

    out = pl.pallas_call(
        functools.partial(_char_pos_kernel, n_cls),
        out_shape=jax.ShapeDtypeStruct((b_pad, c_pad), jnp.float32),
        grid_spec=pltpu.PrefetchScalarGridSpec(
            num_scalar_prefetch=0,
            grid=(steps,),
            in_specs=[
                pl.BlockSpec((bm, seq_len), lambda i: (i, 0)),
                pl.BlockSpec((vocab, c_pad), lambda i: (0, 0)),
                pl.BlockSpec((1, c_pad), lambda i: (0, 0)),
            ],
            out_specs=pl.BlockSpec((bm, c_pad), lambda i: (i, 0)),
        ),
        compiler_params=pltpu.CompilerParams(
            dimension_semantics=("parallel",)),
    )(ids_p, w_eff_p, b_p)

    if trim:
        out = out[:batch, :n_cls]
    return out


def _reference(x_ids, emb_table, w, b):
    emb = emb_table[x_ids]                  # (B, L, D)
    pooled = jnp.mean(emb, axis=1)          # (B, D)
    logits = pooled @ w + b                 # (B, C)
    return jax.nn.softmax(logits, axis=-1)


if __name__ == "__main__":
    key = jax.random.PRNGKey(0)
    k_emb, k_w, k_b, k_x = jax.random.split(key, 4)

    # deterministic parameters (shapes from nn.Embedding / nn.Linear)
    emb_table = jax.random.normal(k_emb, (V, D), dtype=jnp.float32) * 0.1
    emb_table = emb_table.at[0].set(0.0)    # padding_idx=0 row is zeros
    w = jax.random.normal(k_w, (D, C), dtype=jnp.float32) * 0.1   # Linear weight (transposed)
    b = jax.random.normal(k_b, (C,), dtype=jnp.float32) * 0.1     # Linear bias

    x_ids = jax.random.randint(k_x, (B, L), 0, V, dtype=jnp.int32)

    # One-time parameter folding / padding -- NOT part of the per-call path.
    w_eff_p, b_p, n_cls = prepare_params(emb_table, w, b, seq_len=L)

    fwd = jax.jit(functools.partial(char_position_model, n_cls=n_cls))
    out = jax.block_until_ready(fwd(x_ids, w_eff_p, b_p))

    ref = _reference(x_ids, emb_table, w, b)
    assert out.shape == (B, C)
    assert jnp.allclose(out, ref, atol=1e-4, rtol=1e-4)
    assert jnp.allclose(jnp.sum(out, axis=-1), 1.0, atol=1e-4)

    # TODO(synk): CrossEntropyLoss training branch (y is not None) is not
    # implemented; only the inference softmax path is translated.
    print("KERNEL_OK")
</pallas_src>

<mosaic_0001>
module attributes {stable_mosaic.version = 11 : i64} {
  func.func @_char_pos_kernel(%arg0: i32, %arg1: memref<8x8xi32, #tpu.memory_space<vmem>>, %arg2: memref<16x128xf32, #tpu.memory_space<vmem>>, %arg3: memref<1x128xf32, #tpu.memory_space<vmem>>, %arg4: memref<8x128xf32, #tpu.memory_space<vmem>>) attributes {dimension_semantics = [#tpu.dimension_semantics<parallel>], iteration_bounds = array<i64: 1>, scalar_prefetch = 0 : i64, scratch_operands = 0 : i64, tpu.core_type = #tpu.core_type<tc>, window_params = [{transform_indices = @transform_0, window_bounds = array<i64: 8, 8>}, {pipeline_mode = #tpu.pipeline_mode<synchronous>, transform_indices = @transform_1, window_bounds = array<i64: 16, 128>}, {pipeline_mode = #tpu.pipeline_mode<synchronous>, transform_indices = @transform_2, window_bounds = array<i64: 1, 128>}, {transform_indices = @transform_3, window_bounds = array<i64: 8, 128>}]} {
    %c0 = arith.constant 0 : index
    %c0_0 = arith.constant 0 : index
    %0 = vector.load %arg1[%c0, %c0_0] : memref<8x8xi32, #tpu.memory_space<vmem>>, vector<8x8xi32>
    %1 = tpu.iota {dimensions = array<i32: 1>} : vector<8x16xi32>
    %cst = arith.constant 0.000000e+00 : f32
    %2 = vector.broadcast %cst : f32 to vector<8x16xf32>
    %3 = vector.extract_strided_slice %0 {offsets = [0, 0], sizes = [8, 1], strides = [1, 1]} : vector<8x8xi32> to vector<8x1xi32>
    %4 = vector.broadcast %3 : vector<8x1xi32> to vector<8x16xi32>
    %5 = arith.cmpi eq, %4, %1 : vector<8x16xi32>
    %6 = arith.extui %5 : vector<8x16xi1> to vector<8x16xi32>
    %7 = arith.sitofp %6 : vector<8x16xi32> to vector<8x16xf32>
    %8 = arith.addf %2, %7 : vector<8x16xf32>
    %9 = vector.extract_strided_slice %0 {offsets = [0, 1], sizes = [8, 1], strides = [1, 1]} : vector<8x8xi32> to vector<8x1xi32>
    %10 = vector.broadcast %9 : vector<8x1xi32> to vector<8x16xi32>
    %11 = arith.cmpi eq, %10, %1 : vector<8x16xi32>
    %12 = arith.extui %11 : vector<8x16xi1> to vector<8x16xi32>
    %13 = arith.sitofp %12 : vector<8x16xi32> to vector<8x16xf32>
    %14 = arith.addf %8, %13 : vector<8x16xf32>
    %15 = vector.extract_strided_slice %0 {offsets = [0, 2], sizes = [8, 1], strides = [1, 1]} : vector<8x8xi32> to vector<8x1xi32>
    %16 = vector.broadcast %15 : vector<8x1xi32> to vector<8x16xi32>
    %17 = arith.cmpi eq, %16, %1 : vector<8x16xi32>
    %18 = arith.extui %17 : vector<8x16xi1> to vector<8x16xi32>
    %19 = arith.sitofp %18 : vector<8x16xi32> to vector<8x16xf32>
    %20 = arith.addf %14, %19 : vector<8x16xf32>
    %21 = vector.extract_strided_slice %0 {offsets = [0, 3], sizes = [8, 1], strides = [1, 1]} : vector<8x8xi32> to vector<8x1xi32>
    %22 = vector.broadcast %21 : vector<8x1xi32> to vector<8x16xi32>
    %23 = arith.cmpi eq, %22, %1 : vector<8x16xi32>
    %24 = arith.extui %23 : vector<8x16xi1> to vector<8x16xi32>
    %25 = arith.sitofp %24 : vector<8x16xi32> to vector<8x16xf32>
    %26 = arith.addf %20, %25 : vector<8x16xf32>
    %27 = vector.extract_strided_slice %0 {offsets = [0, 4], sizes = [8, 1], strides = [1, 1]} : vector<8x8xi32> to vector<8x1xi32>
    %28 = vector.broadcast %27 : vector<8x1xi32> to vector<8x16xi32>
    %29 = arith.cmpi eq, %28, %1 : vector<8x16xi32>
    %30 = arith.extui %29 : vector<8x16xi1> to vector<8x16xi32>
    %31 = arith.sitofp %30 : vector<8x16xi32> to vector<8x16xf32>
    %32 = arith.addf %26, %31 : vector<8x16xf32>
    %33 = vector.extract_strided_slice %0 {offsets = [0, 5], sizes = [8, 1], strides = [1, 1]} : vector<8x8xi32> to vector<8x1xi32>
    %34 = vector.broadcast %33 : vector<8x1xi32> to vector<8x16xi32>
    %35 = arith.cmpi eq, %34, %1 : vector<8x16xi32>
    %36 = arith.extui %35 : vector<8x16xi1> to vector<8x16xi32>
    %37 = arith.sitofp %36 : vector<8x16xi32> to vector<8x16xf32>
    %38 = arith.addf %32, %37 : vector<8x16xf32>
    %39 = vector.extract_strided_slice %0 {offsets = [0, 6], sizes = [8, 1], strides = [1, 1]} : vector<8x8xi32> to vector<8x1xi32>
    %40 = vector.broadcast %39 : vector<8x1xi32> to vector<8x16xi32>
    %41 = arith.cmpi eq, %40, %1 : vector<8x16xi32>
    %42 = arith.extui %41 : vector<8x16xi1> to vector<8x16xi32>
    %43 = arith.sitofp %42 : vector<8x16xi32> to vector<8x16xf32>
    %44 = arith.addf %38, %43 : vector<8x16xf32>
    %45 = vector.extract_strided_slice %0 {offsets = [0, 7], sizes = [8, 1], strides = [1, 1]} : vector<8x8xi32> to vector<8x1xi32>
    %46 = vector.broadcast %45 : vector<8x1xi32> to vector<8x16xi32>
    %47 = arith.cmpi eq, %46, %1 : vector<8x16xi32>
    %48 = arith.extui %47 : vector<8x16xi1> to vector<8x16xi32>
    %49 = arith.sitofp %48 : vector<8x16xi32> to vector<8x16xf32>
    %50 = arith.addf %44, %49 : vector<8x16xf32>
    %c0_1 = arith.constant 0 : index
    %c0_2 = arith.constant 0 : index
    %51 = vector.load %arg2[%c0_1, %c0_2] : memref<16x128xf32, #tpu.memory_space<vmem>>, vector<16x128xf32>
    %cst_3 = arith.constant dense<0.000000e+00> : vector<8x128xf32>
    %52 = tpu.matmul %50, %51, %cst_3 {dimension_numbers = #tpu.dot_dimension_numbers<[1], [0], [0], [1], [0, 0, 1, 1], [], []>} : vector<8x16xf32>, vector<16x128xf32>, vector<8x128xf32> -> vector<8x128xf32>
    %c0_4 = arith.constant 0 : index
    %c0_5 = arith.constant 0 : index
    %53 = vector.load %arg3[%c0_4, %c0_5] : memref<1x128xf32, #tpu.memory_space<vmem>>, vector<1x128xf32>
    %54 = vector.broadcast %53 : vector<1x128xf32> to vector<8x128xf32>
    %55 = arith.addf %52, %54 : vector<8x128xf32>
    %56 = tpu.iota {dimensions = array<i32: 1>} : vector<8x128xi32>
    %c9_i32 = arith.constant 9 : i32
    %57 = vector.broadcast %c9_i32 : i32 to vector<8x128xi32>
    %58 = arith.cmpi slt, %56, %57 : vector<8x128xi32>
    %cst_6 = arith.constant 0xFF800000 : f32
    %59 = vector.broadcast %cst_6 : f32 to vector<8x128xf32>
    %60 = arith.select %58, %55, %59 : vector<8x128xi1>, vector<8x128xf32>
    %cst_7 = arith.constant dense<0xFF800000> : vector<8xf32>
    %61 = vector.multi_reduction <maximumf>, %60, %cst_7 [1] : vector<8x128xf32> to vector<8xf32>
    %62 = vector.shape_cast %61 : vector<8xf32> to vector<8x1xf32>
    %63 = vector.broadcast %62 : vector<8x1xf32> to vector<8x128xf32>
    %64 = arith.subf %60, %63 : vector<8x128xf32>
    %65 = math.exp %64 : vector<8x128xf32>
    %cst_8 = arith.constant dense<0.000000e+00> : vector<8xf32>
    %66 = vector.multi_reduction <add>, %65, %cst_8 [1] : vector<8x128xf32> to vector<8xf32>
    %67 = vector.shape_cast %66 : vector<8xf32> to vector<8x1xf32>
    %68 = vector.broadcast %67 : vector<8x1xf32> to vector<8x128xf32>
    %69 = arith.divf %65, %68 : vector<8x128xf32>
    %c0_9 = arith.constant 0 : index
    %c0_10 = arith.constant 0 : index
    %70 = vector.load %arg4[%c0_9, %c0_10] : memref<8x128xf32, #tpu.memory_space<vmem>>, vector<8x128xf32>
    tpu.vector_store %arg4[%c0_9, %c0_10], %69 {strides = array<i32>} : memref<8x128xf32, #tpu.memory_space<vmem>>, vector<8x128xf32>,
    return
  }
  func.func @transform_0(%arg0: i32) -> (i32, i32) {
    %c0_i32 = arith.constant 0 : i32
    %c0_i32_0 = arith.constant 0 : i32
    return %arg0, %c0_i32 : i32, i32
  }
  func.func @transform_1(%arg0: i32) -> (i32, i32) {
    %c0_i32 = arith.constant 0 : i32
    %c0_i32_0 = arith.constant 0 : i32
    %c0_i32_1 = arith.constant 0 : i32
    return %c0_i32, %c0_i32_0 : i32, i32
  }
  func.func @transform_2(%arg0: i32) -> (i32, i32) {
    %c0_i32 = arith.constant 0 : i32
    %c0_i32_0 = arith.constant 0 : i32
    %c0_i32_1 = arith.constant 0 : i32
    return %c0_i32, %c0_i32_0 : i32, i32
  }
  func.func @transform_3(%arg0: i32) -> (i32, i32) {
    %c0_i32 = arith.constant 0 : i32
    %c0_i32_0 = arith.constant 0 : i32
    return %arg0, %c0_i32 : i32, i32
  }
}

</mosaic_0001>

<bundles_post_ra>
// kernel: char_position_model.1
= control target key start
LH: loop header
LB: loop body
LE: loop exit
PB: predicated region body
PF: predicated region fallthrough
CT: control target
= control target key end

     0   :  { %8 = vsyncpa [#allocation3], 0  ;;  %s372_s0 = inlined_call_operand.hbm [shape: s32[8,8], index: 0, kind: input, shape index: {}]   ;;  %s373_s1 = inlined_call_operand.hbm [shape: f32[16,128], index: 1, kind: input, shape index: {}]   ;;  %s374_s2 = inlined_call_operand.vmem [shape: f32[1,128], index: 2, kind: input, shape index: {}]   ;;  %s375_s3 = inlined_call_operand.hbm [shape: f32[8,128], index: 3, kind: output, shape index: {}]  }
   0x1   :  { %9 = vsyncpa [#allocation6], 0 }
   0x2   :  { %10 = vsyncpa [#allocation4], 0  ;;  %s325_s12 = smov [#allocation2]   ;;  %s326_s14 = smov [#allocation5]  }
   0x3   :  { %s17_s13 = sshll.u32 %s325_s12, 4  ;;  %s26_s15 = sshll.u32 %s326_s14, 4  ;;  %s18_s13 = int_to_ptr.vmem [resolvable:$true] %s17_s13  ;;  %s27_s15 = int_to_ptr.vmem [resolvable:$true] %s26_s15 }
   0x4   :  { %s267_s16 = scalar_lea.vmem %s18_s13, 128  ;;  %p272_p1 = scmp.lt.s32.totalorder %s18_s13, %s18_s13 }
   0x5   :  { %p268_p0 = scmp.ne.s32.totalorder %s18_s13, %s267_s16  ;;  %p273_p2 = scmp.lt.s32.totalorder %s267_s16, %s267_s16 }
   0x7   :  { %p274_p3 = por %p273_p2, %p272_p1 }
   0x9   :  { %p275_p4 = pnand %p274_p3, %p268_p0 }
   0xb   :  { %278 = shalt.err (!%p275_p4)
}
   0xc   :  { %20 = dma.hbm_to_vmem [thread:$0]  %s372_s0, 128, %s18_s13, [#allocation3]  }
   0xd   :  { %s287_s19 = scalar_lea.vmem %s27_s15, 256  ;;  %p292_p6 = scmp.lt.s32.totalorder %s27_s15, %s27_s15 }
   0xe   :  { %p288_p5 = scmp.ne.s32.totalorder %s27_s15, %s287_s19  ;;  %p293_p7 = scmp.lt.s32.totalorder %s287_s19, %s287_s19 }
  0x10   :  { %p294_p8 = por %p293_p7, %p292_p6 }
  0x12   :  { %p295_p9 = pnand %p294_p8, %p288_p5 }
  0x14   :  { %298 = shalt.err (!%p295_p9)
}
  0x15   :  { %s327_s20 = smov 128   ;;  %s328_s21 = smov 8  }
  0x16   :  { %32 = dma.hbm_to_vmem [thread:$0]  %s373_s1, 256, %s27_s15, [#allocation6], %s327_s20, %s327_s20, %s328_s21  }
  0x17   :  { %319 = dma.done.wait [#allocation3], 128  }
  0x18   :  { %320 = vsyncadd [#allocation3], 4294967168 }
  0x19   :  { %321 = dma.done.wait [#allocation6], 256  }
  0x1a   :  { %322 = vsyncadd [#allocation6], 4294967040  ;;  %v329_v0 = vmov 2   ;;  %v330_v1 = vmov 0   ;;  %v331_v2 = vmov 0.0   ;;  %v41_v3 = vld [vmem:[#allocation2] sm:$0xff]  ;;  %v42_v12 = vlaneseq }
  0x1b   :  { %248 = vset.pattern.permute.xlu1 %v329_v0  ;;  %246 = vset.pattern.permute.xlu0 %v330_v1  ;;  %v332_v4 = vmov 3   ;;  %v333_v5 = vmov 1   ;;  %v334_v6 = vmov 4   ;;  %v335_v7 = vmov 5   ;;  %v101_v10 = vld [vmem:[#allocation5 + $0x8] sm:$0xff]  ;;  %v100_v11 = vld [vmem:[#allocation5] sm:$0xff] }
  0x1c   :  { %224 = vmatprep.subr.mxu0 %v331_v2  ;;  %59 = vperm.xlu1 %248, %v41_v3   ;;  %v336_v8 = vmov 6   ;;  %v337_v9 = vmov 7   ;;  %vm338_vm0 = vmmov 0   ;;  %v43_v15 = vand.u32 127, %v42_v12  ;;  %v219_v37 = vld [vmem:[%s374_s2] ss:$0 sm:$0xff] }
  0x1d   :  { %45 = vperm.xlu0 %246, %v41_v3   ;;  %225 = vmatpush3.msra.mxu0 %v101_v10  ;;  %vm109_vm9 = vcmask 130048   ;;  %s339_s24 = smov [#allocation7]  }
  0x1e   :  { %226 = vmatprep.subr.mxu0 %v331_v2  ;;  %228 = vmatprep.mubr.msk.f32.mxu0 %vm338_vm0, %v331_v2  ;;  %vm183_vm10 = vcmp.lt.s32.totalorder %v43_v15, 9  ;;  %s201_s25 = sshll.u32 %s339_s24, 4  ;;  %s202_s25 = int_to_ptr.vmem [resolvable:$true] %s201_s25 }
  0x1f   :  { %227 = vmatpush3.msra.mxu0 %v100_v11  ;;  %s299_s2 = scalar_lea.vmem %s202_s25, 128  ;;  %p304_p11 = scmp.lt.s32.totalorder %s202_s25, %s202_s25 }
  0x20   :  { %249 = vset.pattern.permute.xlu1 %v332_v4  ;;  %p300_p10 = scmp.ne.s32.totalorder %s202_s25, %s299_s2  ;;  %p305_p12 = scmp.lt.s32.totalorder %s299_s2, %s299_s2 }
  0x21   :  { %247 = vset.pattern.permute.xlu0 %v333_v5  ;;  %66 = vperm.xlu1 %249, %v41_v3  }
  0x22   :  { %52 = vperm.xlu0 %247, %v41_v3   ;;  %p306_p13 = por %p305_p12, %p304_p11 }
  0x24   :  { %p307_p0 = pnand %p306_p13, %p300_p10 }
  0x25   :  { %250 = vset.pattern.permute.xlu1 %v334_v6 }
  0x26   :  { %251 = vset.pattern.permute.xlu0 %v335_v7  ;;  %73 = vperm.xlu1 %250, %v41_v3  }
  0x27   :  { %80 = vperm.xlu0 %251, %v41_v3  }
  0x2a   :  { %252 = vset.pattern.permute.xlu1 %v336_v8 }
  0x2b   :  { %254 = vset.pattern.permute.xlu0 %v337_v9  ;;  %87 = vperm.xlu1 %252, %v41_v3  }
  0x2f   :  { %253 = vset.pattern.permute.xlu1 %v337_v9 }
  0x30   :  { %94 = vperm.xlu1 %253, %v41_v3  }
  0x97   :  { %v60_v13 = vpop.permute.xlu1 %59 }
  0x98   :  { %v46_v14 = vpop.permute.xlu0 %45  ;;  %vm61_vm2 = vcmp.eq.s32.totalorder %v60_v13, %v43_v15 }
  0x99   :  { %vm47_vm1 = vcmp.eq.s32.totalorder %v46_v14, %v43_v15  ;;  %v213_v21 = vsel %vm61_vm2, 1.0, %v331_v2 }
  0x9a   :  { %v211_v18 = vsel %vm47_vm1, 1.0, %v331_v2 }
  0x9c   :  { %v67_v16 = vpop.permute.xlu1 %66 }
  0x9d   :  { %v53_v17 = vpop.permute.xlu0 %52  ;;  %vm68_vm4 = vcmp.eq.s32.totalorder %v67_v16, %v43_v15 }
  0x9e   :  { %vm54_vm3 = vcmp.eq.s32.totalorder %v53_v17, %v43_v15  ;;  %v214_v25 = vsel %vm68_vm4, 1.0, %v331_v2 }
  0x9f   :  { %v212_v19 = vsel %vm54_vm3, 1.0, %v331_v2 }
  0xa0   :  { %v57_v20 = vadd.f32 %v212_v19, %v211_v18 }
  0xa1   :  { %v74_v23 = vpop.permute.xlu1 %73 }
  0xa2   :  { %v64_v22 = vadd.f32 %v213_v21, %v57_v20  ;;  %v81_v24 = vpop.permute.xlu0 %80  ;;  %vm75_vm5 = vcmp.eq.s32.totalorder %v74_v23, %v43_v15 }
  0xa3   :  { %vm82_vm6 = vcmp.eq.s32.totalorder %v81_v24, %v43_v15  ;;  %v215_v27 = vsel %vm75_vm5, 1.0, %v331_v2 }
  0xa4   :  { %v71_v26 = vadd.f32 %v214_v25, %v64_v22  ;;  %v216_v29 = vsel %vm82_vm6, 1.0, %v331_v2 }
  0xa6   :  { %v78_v28 = vadd.f32 %v215_v27, %v71_v26  ;;  %v88_v30 = vpop.permute.xlu1 %87 }
  0xa7   :  { %vm89_vm7 = vcmp.eq.s32.totalorder %v88_v30, %v43_v15 }
  0xa8   :  { %v85_v31 = vadd.f32 %v216_v29, %v78_v28  ;;  %v217_v32 = vsel %vm89_vm7, 1.0, %v331_v2 }
  0xaa   :  { %v92_v34 = vadd.f32 %v217_v32, %v85_v31 }
  0xab   :  { %v95_v33 = vpop.permute.xlu1 %94 }
  0xac   :  { %vm96_vm8 = vcmp.eq.s32.totalorder %v95_v33, %v43_v15 }
  0xad   :  { %v218_v35 = vsel %vm96_vm8, 1.0, %v331_v2 }
  0xae   :  { %v99_v36 = vadd.f32 %v218_v35, %v92_v34 }
  0xb0   :  { %229 = vmatmul.mubr.msk.f32.vlgmr.msra.gmra.mxu0 %vm109_vm9, %v99_v36 }
 0x170   :  { %v179_v38 = vpop.f32.mrf.mxu0 }
 0x171   :  { %v180_v39 = vadd.f32 %v219_v37, %v179_v38 }
 0x172   :  { %v230_v40 = vpop.f32.mrf.mxu0 }
 0x173   :  { %v184_v41 = vsel %vm183_vm10, %v180_v39, -inf }
 0x174   :  { %185 = vmax.xlane.f32.xlu0 %v184_v41 }
 0x1fd   :  { %v186_v42 = vpop.xlane.xlu0 %185 }
 0x1fe   :  { %v187_v43 = vsub.f32 %v184_v41, %v186_v42 }
 0x200   :  { %v188_v44 = vmul.f32 1.442695, %v187_v43 }
 0x202   :  { %255 = vpow2.f32 %v188_v44 }
 0x20f   :  { %v256_v45 = vpop.eup %255 }
 0x210   :  { %190 = vadd.xlane.f32.xlu1 %v256_v45 }
 0x299   :  { %v191_v46 = vpop.xlane.xlu1 %190 }
 0x29a   :  { %257 = vrcp.f32 %v191_v46 }
 0x2a7   :  { %v258_v47 = vpop.eup %257 }
 0x2a8   :  { %v193_v48 = vmul.f32 %v258_v47, %v256_v45 }
 0x2aa   :  { %194 = vst [vmem:[#allocation7] sm:$0xff] %v193_v48 }
 0x2ab   :  { %310 = shalt.err (!%p307_p0)
}
 0x2ac   :  { %204 = dma.vmem_to_hbm [thread:$0]  %s202_s25, 128, %s375_s3, [#allocation4]  }
 0x2ad   :  { %323 = dma.done.wait [#allocation4], 128  }
 0x2ae   :  { %324 = vsyncadd [#allocation4], 4294967168 }
 0x2af   :  { %208 = vsyncpa [#allocation3], 1 }
 0x2b0   :  { %209 = vsyncpa [#allocation6], 1 }
 0x2b1   :  { %210 = vsyncpa [#allocation4], 1 }

</bundles_post_ra>
